<compile_context>
chip_gen: v6e
topology: v6e:2x2x1
jax: 0.10.0
libtpu: 0.0.40
codegen_flags: <defaults>
</compile_context>

<pallas_src>
import functools

import jax
import jax.numpy as jnp
from jax.experimental import pallas as pl
from jax.experimental.pallas import tpu as pltpu


def _coordatt_kernel(x_ref, ph_ref, pw_ref, eh_ref, ew_ref,
                     w1_ref, b1_ref, wh_ref, bh_ref, ww_ref, bw_ref,
                     o_ref, *, nb, c, h, w):
    f_pad = x_ref.shape[-1]

    # Block-wide view: (NB, C, F) -> (NB*C, F).  Native dtype (no f32 copy).
    xb = x_ref[...]
    x2 = xb.reshape(nb * c, f_pad)

    # Coordinate pooling for the whole block on the MXU.  ph/pw are 0/1 bf16
    # one-hots; the exact mean scale is a separate f32 scalar multiply.
    x_h2 = jnp.dot(x2, ph_ref[...], preferred_element_type=jnp.float32) * (1.0 / w)  # (NB*C, H)
    x_w2 = jnp.dot(x2, pw_ref[...], preferred_element_type=jnp.float32) * (1.0 / h)  # (NB*C, W)

    w1 = w1_ref[...]
    b1 = b1_ref[...]
    wh = wh_ref[...]
    bh = bh_ref[...]
    ww = ww_ref[...]
    bw = bw_ref[...]

    # Tiny per-image 1x1 convs: statically unrolled (NB is a compile-time
    # constant).  No cat([x_h, x_w]) -> no non-128-aligned lane slices; a 1x1
    # conv applied separately to x_h and x_w is identical to conv1(cat(...)).
    ah_rows = []
    aw_rows = []
    for b in range(nb):
        xh_b = x_h2[b * c:(b + 1) * c, :]                                   # (C, H)
        xw_b = x_w2[b * c:(b + 1) * c, :]                                   # (C, W)
        y_h = jnp.maximum(jnp.dot(w1, xh_b, preferred_element_type=jnp.float32) + b1, 0.0)
        y_w = jnp.maximum(jnp.dot(w1, xw_b, preferred_element_type=jnp.float32) + b1, 0.0)
        ah_rows.append(jax.nn.sigmoid(
            jnp.dot(wh, y_h, preferred_element_type=jnp.float32) + bh))     # (OUP, H)
        aw_rows.append(jax.nn.sigmoid(
            jnp.dot(ww, y_w, preferred_element_type=jnp.float32) + bw))     # (OUP, W)
    a_h = ah_rows[0] if nb == 1 else jnp.concatenate(ah_rows, axis=0)       # (NB*OUP, H)
    a_w = aw_rows[0] if nb == 1 else jnp.concatenate(aw_rows, axis=0)       # (NB*OUP, W)

    # Expand both gates onto the flattened H*W axis for the whole block (MXU
    # selection matmuls, 0/1 bf16) and combine once.
    g = (jnp.dot(a_h, eh_ref[...], preferred_element_type=jnp.float32) *
         jnp.dot(a_w, ew_ref[...], preferred_element_type=jnp.float32))     # (NB*C, F)

    # out = identity * a_w * a_h  (lane-dense, block-wide).
    if x2.dtype == jnp.float32:
        out2 = x2 * g
    else:
        # bf16 VPU path (v6e/v7x): keep the big elementwise op in the native
        # dtype; rounding differs negligibly from multiply-then-cast.
        out2 = x2 * g.astype(x2.dtype)
    o_ref[...] = out2.reshape(o_ref.shape).astype(o_ref.dtype)


def _const_spec(shape):
    nd = len(shape)
    return pl.BlockSpec(shape, lambda i: (0,) * nd)


def _chip_budgets():
    """(block_bytes, vmem_limit_bytes, prefer_even_grid_steps) per generation."""
    kind = ""
    try:
        kind = jax.devices()[0].device_kind.lower()
    except Exception:
        pass
    if "v7" in kind:
        # 64 MiB VMEM, 2 TensorCores, 3.2 TB/s HBM: moderate blocks, even steps.
        return 7 << 20, 48 << 20, True
    if "v5" in kind or "v6" in kind:
        # 128 MiB VMEM, single TC: go big, no need to split the grid.
        return 14 << 20, 96 << 20, False
    # Unknown chip: conservative budget that fits every generation.
    return 7 << 20, 48 << 20, False


def _pick_block_batch(n, per_image_bytes, target_bytes, prefer_even_steps):
    """Largest divisor of n whose block fits target_bytes (capped for unroll
    size); on v7x prefer an even number of grid steps so both TCs get work."""
    cap = max(1, min(n, 32, target_bytes // max(per_image_bytes, 1)))
    divisors = [d for d in range(1, n + 1) if n % d == 0 and d <= cap]
    if prefer_even_steps:
        even = [d for d in divisors if (n // d) >= 2 and (n // d) % 2 == 0]
        if even:
            return max(even)
        multi = [d for d in divisors if (n // d) >= 2]
        if multi:
            return max(multi)
    return max(divisors)


def coord_att(x, w1, b1, wh, bh, ww, bw, *, block_bytes=None):
    n, c, h, w = x.shape
    mip = w1.shape[0]
    oup = wh.shape[0]
    assert oup == c, "CoordAtt gating (identity * a_w * a_h) requires oup == inp"
    f = h * w
    f_pad = ((f + 127) // 128) * 128          # keep the output store lane-dense

    auto_block, vmem_limit, prefer_even = _chip_budgets()
    if block_bytes is None:
        block_bytes = auto_block

    # Lane-dense layout for the kernel: (N, C, F_pad).
    x_flat = x.reshape(n, c, f)
    if f_pad != f:
        x_flat = jnp.pad(x_flat, ((0, 0), (0, 0), (0, f_pad - f)))

    # Pure 0/1 pooling / expansion matrices in bf16 (exact; mean scale applied
    # in-kernel in f32).  Padded F rows/cols are all-zero -> contribute nothing.
    pos = jnp.arange(f, dtype=jnp.int32)
    row = pos // w                                               # h index
    col = pos % w                                                # w index
    ph = jax.nn.one_hot(row, h, dtype=jnp.bfloat16)              # (F, H)
    pw = jax.nn.one_hot(col, w, dtype=jnp.bfloat16)              # (F, W)
    if f_pad != f:
        ph = jnp.pad(ph, ((0, f_pad - f), (0, 0)))
        pw = jnp.pad(pw, ((0, f_pad - f), (0, 0)))
    eh = ph.T                                                    # (H, F_pad)
    ew = pw.T                                                    # (W, F_pad)

    # Tiny weights: keep in f32 (resident in VMEM across grid steps).
    w1 = w1.astype(jnp.float32); b1 = b1.astype(jnp.float32)
    wh = wh.astype(jnp.float32); bh = bh.astype(jnp.float32)
    ww = ww.astype(jnp.float32); bw = bw.astype(jnp.float32)

    itemsize = jnp.dtype(x.dtype).itemsize
    nb = _pick_block_batch(n, c * f_pad * itemsize, block_bytes, prefer_even)
    grid = (n // nb,)

    cost = pl.CostEstimate(
        flops=int(2 * n * c * f * (h + w)          # pooling matmuls
                  + 2 * n * mip * c * (h + w)      # conv1
                  + 2 * n * oup * mip * (h + w)    # conv_h + conv_w
                  + 2 * n * oup * f * (h + w)      # gate expansion matmuls
                  + 2 * n * c * f),                # g_h*g_w and x*g
        transcendentals=int(n * oup * (h + w)),    # sigmoids
        bytes_accessed=int(2 * n * c * f_pad * itemsize),
    )

    kernel = functools.partial(_coordatt_kernel, nb=nb, c=c, h=h, w=w)

    out_flat = pl.pallas_call(
        kernel,
        out_shape=jax.ShapeDtypeStruct((n, c, f_pad), x.dtype),
        grid_spec=pltpu.PrefetchScalarGridSpec(
            num_scalar_prefetch=0,
            grid=grid,
            in_specs=[
                pl.BlockSpec((nb, c, f_pad), lambda i: (i, 0, 0)),   # x block
                _const_spec((f_pad, h)),       # ph
                _const_spec((f_pad, w)),       # pw
                _const_spec((h, f_pad)),       # eh
                _const_spec((w, f_pad)),       # ew
                _const_spec((mip, c)),         # conv1 weight
                _const_spec((mip, 1)),         # conv1 bias
                _const_spec((oup, mip)),       # conv_h weight
                _const_spec((oup, 1)),         # conv_h bias
                _const_spec((oup, mip)),       # conv_w weight
                _const_spec((oup, 1)),         # conv_w bias
            ],
            out_specs=pl.BlockSpec((nb, c, f_pad), lambda i: (i, 0, 0)),
        ),
        compiler_params=pltpu.CompilerParams(
            dimension_semantics=("parallel",),
            vmem_limit_bytes=vmem_limit,
        ),
        cost_estimate=cost,
    )(x_flat, ph, pw, eh, ew, w1, b1, wh, bh, ww, bw)

    if f_pad != f:
        out_flat = out_flat[..., :f]
    return out_flat.reshape(n, c, h, w)


def coord_att_ref(x, w1, b1, wh, bh, ww, bw):
    """Pure-JAX reference matching the PyTorch forward."""
    x_h = jnp.mean(x, axis=3)  # (N, C, H)
    x_w = jnp.mean(x, axis=2)  # (N, C, W)
    y_h = jax.nn.relu(jnp.einsum('mc,nch->nmh', w1, x_h) + b1[None])
    y_w = jax.nn.relu(jnp.einsum('mc,ncw->nmw', w1, x_w) + b1[None])
    a_h = jax.nn.sigmoid(jnp.einsum('om,nmh->noh', wh, y_h) + bh[None])
    a_w = jax.nn.sigmoid(jnp.einsum('om,nmw->now', ww, y_w) + bw[None])
    return x * a_w[:, :, None, :] * a_h[:, :, :, None]


if __name__ == "__main__":
    N, C, H, W = 2, 4, 16, 16
    inp = oup = C
    reduction = 32
    mip = max(8, inp // reduction)

    key = jax.random.PRNGKey(0)
    ks = jax.random.split(key, 7)
    x = jax.random.normal(ks[0], (N, C, H, W), jnp.float32)
    # Synthetic parameters (shapes from the module __init__):
    #   conv1: (mip, inp, 1, 1) -> (mip, inp);  conv_h/conv_w: (oup, mip, 1, 1) -> (oup, mip)
    w1 = 0.2 * jax.random.normal(ks[1], (mip, inp), jnp.float32)
    b1 = 0.1 * jax.random.normal(ks[2], (mip, 1), jnp.float32)
    wh = 0.2 * jax.random.normal(ks[3], (oup, mip), jnp.float32)
    bh = 0.1 * jax.random.normal(ks[4], (oup, 1), jnp.float32)
    ww = 0.2 * jax.random.normal(ks[5], (oup, mip), jnp.float32)
    bw = 0.1 * jax.random.normal(ks[6], (oup, 1), jnp.float32)

    out = coord_att(x, w1, b1, wh, bh, ww, bw)
    jax.block_until_ready(out)

    ref = coord_att_ref(x, w1, b1, wh, bh, ww, bw)
    max_err = float(jnp.max(jnp.abs(out - ref)))
    assert out.shape == (N, C, H, W)
    assert max_err < 5e-5, f"mismatch vs reference: {max_err}"

    print("KERNEL_OK")
</pallas_src>

<mosaic_0001>
module attributes {stable_mosaic.version = 11 : i64} {
  func.func @_coordatt_kernel(%arg0: i32, %arg1: memref<2x4x256xf32, #tpu.memory_space<vmem>>, %arg2: memref<256x16xbf16, #tpu.memory_space<vmem>>, %arg3: memref<256x16xbf16, #tpu.memory_space<vmem>>, %arg4: memref<16x256xbf16, #tpu.memory_space<vmem>>, %arg5: memref<16x256xbf16, #tpu.memory_space<vmem>>, %arg6: memref<8x4xf32, #tpu.memory_space<vmem>>, %arg7: memref<8x1xf32, #tpu.memory_space<vmem>>, %arg8: memref<4x8xf32, #tpu.memory_space<vmem>>, %arg9: memref<4x1xf32, #tpu.memory_space<vmem>>, %arg10: memref<4x8xf32, #tpu.memory_space<vmem>>, %arg11: memref<4x1xf32, #tpu.memory_space<vmem>>, %arg12: memref<2x4x256xf32, #tpu.memory_space<vmem>>) attributes {dimension_semantics = [#tpu.dimension_semantics<parallel>], iteration_bounds = array<i64: 1>, scalar_prefetch = 0 : i64, scratch_operands = 0 : i64, tpu.core_type = #tpu.core_type<tc>, window_params = [{transform_indices = @transform_0, window_bounds = array<i64: 2, 4, 256>}, {pipeline_mode = #tpu.pipeline_mode<synchronous>, transform_indices = @transform_1, window_bounds = array<i64: 256, 16>}, {pipeline_mode = #tpu.pipeline_mode<synchronous>, transform_indices = @transform_2, window_bounds = array<i64: 256, 16>}, {pipeline_mode = #tpu.pipeline_mode<synchronous>, transform_indices = @transform_3, window_bounds = array<i64: 16, 256>}, {pipeline_mode = #tpu.pipeline_mode<synchronous>, transform_indices = @transform_4, window_bounds = array<i64: 16, 256>}, {pipeline_mode = #tpu.pipeline_mode<synchronous>, transform_indices = @transform_5, window_bounds = array<i64: 8, 4>}, {pipeline_mode = #tpu.pipeline_mode<synchronous>, transform_indices = @transform_6, window_bounds = array<i64: 8, 1>}, {pipeline_mode = #tpu.pipeline_mode<synchronous>, transform_indices = @transform_7, window_bounds = array<i64: 4, 8>}, {pipeline_mode = #tpu.pipeline_mode<synchronous>, transform_indices = @transform_8, window_bounds = array<i64: 4, 1>}, {pipeline_mode = #tpu.pipeline_mode<synchronous>, transform_indices = @transform_9, window_bounds = array<i64: 4, 8>}, {pipeline_mode = #tpu.pipeline_mode<synchronous>, transform_indices = @transform_10, window_bounds = array<i64: 4, 1>}, {transform_indices = @transform_11, window_bounds = array<i64: 2, 4, 256>}]} {
    %c0 = arith.constant 0 : index
    %c0_0 = arith.constant 0 : index
    %c0_1 = arith.constant 0 : index
    %0 = vector.load %arg1[%c0, %c0_0, %c0_1] : memref<2x4x256xf32, #tpu.memory_space<vmem>>, vector<2x4x256xf32>
    %1 = vector.shape_cast %0 : vector<2x4x256xf32> to vector<8x256xf32>
    %c0_2 = arith.constant 0 : index
    %c0_3 = arith.constant 0 : index
    %2 = vector.load %arg2[%c0_2, %c0_3] : memref<256x16xbf16, #tpu.memory_space<vmem>>, vector<256x16xbf16>
    %cst = arith.constant dense<0.000000e+00> : vector<8x16xf32>
    %3 = tpu.matmul %1, %2, %cst {dimension_numbers = #tpu.dot_dimension_numbers<[1], [0], [0], [1], [0, 0, 1, 1], [], []>} : vector<8x256xf32>, vector<256x16xbf16>, vector<8x16xf32> -> vector<8x16xf32>
    %cst_4 = arith.constant 6.250000e-02 : f32
    %4 = vector.broadcast %cst_4 : f32 to vector<8x16xf32>
    %5 = arith.mulf %3, %4 : vector<8x16xf32>
    %c0_5 = arith.constant 0 : index
    %c0_6 = arith.constant 0 : index
    %6 = vector.load %arg3[%c0_5, %c0_6] : memref<256x16xbf16, #tpu.memory_space<vmem>>, vector<256x16xbf16>
    %cst_7 = arith.constant dense<0.000000e+00> : vector<8x16xf32>
    %7 = tpu.matmul %1, %6, %cst_7 {dimension_numbers = #tpu.dot_dimension_numbers<[1], [0], [0], [1], [0, 0, 1, 1], [], []>} : vector<8x256xf32>, vector<256x16xbf16>, vector<8x16xf32> -> vector<8x16xf32>
    %cst_8 = arith.constant 6.250000e-02 : f32
    %8 = vector.broadcast %cst_8 : f32 to vector<8x16xf32>
    %9 = arith.mulf %7, %8 : vector<8x16xf32>
    %c0_9 = arith.constant 0 : index
    %c0_10 = arith.constant 0 : index
    %10 = vector.load %arg6[%c0_9, %c0_10] : memref<8x4xf32, #tpu.memory_space<vmem>>, vector<8x4xf32>
    %c0_11 = arith.constant 0 : index
    %c0_12 = arith.constant 0 : index
    %11 = vector.load %arg7[%c0_11, %c0_12] : memref<8x1xf32, #tpu.memory_space<vmem>>, vector<8x1xf32>
    %c0_13 = arith.constant 0 : index
    %c0_14 = arith.constant 0 : index
    %12 = vector.load %arg8[%c0_13, %c0_14] : memref<4x8xf32, #tpu.memory_space<vmem>>, vector<4x8xf32>
    %c0_15 = arith.constant 0 : index
    %c0_16 = arith.constant 0 : index
    %13 = vector.load %arg9[%c0_15, %c0_16] : memref<4x1xf32, #tpu.memory_space<vmem>>, vector<4x1xf32>
    %c0_17 = arith.constant 0 : index
    %c0_18 = arith.constant 0 : index
    %14 = vector.load %arg10[%c0_17, %c0_18] : memref<4x8xf32, #tpu.memory_space<vmem>>, vector<4x8xf32>
    %c0_19 = arith.constant 0 : index
    %c0_20 = arith.constant 0 : index
    %15 = vector.load %arg11[%c0_19, %c0_20] : memref<4x1xf32, #tpu.memory_space<vmem>>, vector<4x1xf32>
    %16 = vector.extract_strided_slice %5 {offsets = [0, 0], sizes = [4, 16], strides = [1, 1]} : vector<8x16xf32> to vector<4x16xf32>
    %17 = vector.extract_strided_slice %9 {offsets = [0, 0], sizes = [4, 16], strides = [1, 1]} : vector<8x16xf32> to vector<4x16xf32>
    %cst_21 = arith.constant dense<0.000000e+00> : vector<8x16xf32>
    %18 = tpu.matmul %10, %16, %cst_21 {dimension_numbers = #tpu.dot_dimension_numbers<[1], [0], [0], [1], [0, 0, 1, 1], [], []>} : vector<8x4xf32>, vector<4x16xf32>, vector<8x16xf32> -> vector<8x16xf32>
    %19 = vector.broadcast %11 : vector<8x1xf32> to vector<8x16xf32>
    %20 = arith.addf %18, %19 : vector<8x16xf32>
    %cst_22 = arith.constant 0.000000e+00 : f32
    %21 = vector.broadcast %cst_22 : f32 to vector<8x16xf32>
    %22 = arith.maximumf %20, %21 : vector<8x16xf32>
    %cst_23 = arith.constant dense<0.000000e+00> : vector<8x16xf32>
    %23 = tpu.matmul %10, %17, %cst_23 {dimension_numbers = #tpu.dot_dimension_numbers<[1], [0], [0], [1], [0, 0, 1, 1], [], []>} : vector<8x4xf32>, vector<4x16xf32>, vector<8x16xf32> -> vector<8x16xf32>
    %24 = vector.broadcast %11 : vector<8x1xf32> to vector<8x16xf32>
    %25 = arith.addf %23, %24 : vector<8x16xf32>
    %cst_24 = arith.constant 0.000000e+00 : f32
    %26 = vector.broadcast %cst_24 : f32 to vector<8x16xf32>
    %27 = arith.maximumf %25, %26 : vector<8x16xf32>
    %cst_25 = arith.constant dense<0.000000e+00> : vector<4x16xf32>
    %28 = tpu.matmul %12, %22, %cst_25 {dimension_numbers = #tpu.dot_dimension_numbers<[1], [0], [0], [1], [0, 0, 1, 1], [], []>} : vector<4x8xf32>, vector<8x16xf32>, vector<4x16xf32> -> vector<4x16xf32>
    %29 = vector.broadcast %13 : vector<4x1xf32> to vector<4x16xf32>
    %30 = arith.addf %28, %29 : vector<4x16xf32>
    %31 = arith.negf %30 : vector<4x16xf32>
    %32 = math.exp %31 : vector<4x16xf32>
    %cst_26 = arith.constant 1.000000e+00 : f32
    %33 = vector.broadcast %cst_26 : f32 to vector<4x16xf32>
    %34 = arith.addf %33, %32 : vector<4x16xf32>
    %35 = arith.divf %33, %34 : vector<4x16xf32>
    %cst_27 = arith.constant dense<0.000000e+00> : vector<4x16xf32>
    %36 = tpu.matmul %14, %27, %cst_27 {dimension_numbers = #tpu.dot_dimension_numbers<[1], [0], [0], [1], [0, 0, 1, 1], [], []>} : vector<4x8xf32>, vector<8x16xf32>, vector<4x16xf32> -> vector<4x16xf32>
    %37 = vector.broadcast %15 : vector<4x1xf32> to vector<4x16xf32>
    %38 = arith.addf %36, %37 : vector<4x16xf32>
    %39 = arith.negf %38 : vector<4x16xf32>
    %40 = math.exp %39 : vector<4x16xf32>
    %cst_28 = arith.constant 1.000000e+00 : f32
    %41 = vector.broadcast %cst_28 : f32 to vector<4x16xf32>
    %42 = arith.addf %41, %40 : vector<4x16xf32>
    %43 = arith.divf %41, %42 : vector<4x16xf32>
    %44 = vector.extract_strided_slice %5 {offsets = [4, 0], sizes = [4, 16], strides = [1, 1]} : vector<8x16xf32> to vector<4x16xf32>
    %45 = vector.extract_strided_slice %9 {offsets = [4, 0], sizes = [4, 16], strides = [1, 1]} : vector<8x16xf32> to vector<4x16xf32>
    %cst_29 = arith.constant dense<0.000000e+00> : vector<8x16xf32>
    %46 = tpu.matmul %10, %44, %cst_29 {dimension_numbers = #tpu.dot_dimension_numbers<[1], [0], [0], [1], [0, 0, 1, 1], [], []>} : vector<8x4xf32>, vector<4x16xf32>, vector<8x16xf32> -> vector<8x16xf32>
    %47 = vector.broadcast %11 : vector<8x1xf32> to vector<8x16xf32>
    %48 = arith.addf %46, %47 : vector<8x16xf32>
    %cst_30 = arith.constant 0.000000e+00 : f32
    %49 = vector.broadcast %cst_30 : f32 to vector<8x16xf32>
    %50 = arith.maximumf %48, %49 : vector<8x16xf32>
    %cst_31 = arith.constant dense<0.000000e+00> : vector<8x16xf32>
    %51 = tpu.matmul %10, %45, %cst_31 {dimension_numbers = #tpu.dot_dimension_numbers<[1], [0], [0], [1], [0, 0, 1, 1], [], []>} : vector<8x4xf32>, vector<4x16xf32>, vector<8x16xf32> -> vector<8x16xf32>
    %52 = vector.broadcast %11 : vector<8x1xf32> to vector<8x16xf32>
    %53 = arith.addf %51, %52 : vector<8x16xf32>
    %cst_32 = arith.constant 0.000000e+00 : f32
    %54 = vector.broadcast %cst_32 : f32 to vector<8x16xf32>
    %55 = arith.maximumf %53, %54 : vector<8x16xf32>
    %cst_33 = arith.constant dense<0.000000e+00> : vector<4x16xf32>
    %56 = tpu.matmul %12, %50, %cst_33 {dimension_numbers = #tpu.dot_dimension_numbers<[1], [0], [0], [1], [0, 0, 1, 1], [], []>} : vector<4x8xf32>, vector<8x16xf32>, vector<4x16xf32> -> vector<4x16xf32>
    %57 = vector.broadcast %13 : vector<4x1xf32> to vector<4x16xf32>
    %58 = arith.addf %56, %57 : vector<4x16xf32>
    %59 = arith.negf %58 : vector<4x16xf32>
    %60 = math.exp %59 : vector<4x16xf32>
    %cst_34 = arith.constant 1.000000e+00 : f32
    %61 = vector.broadcast %cst_34 : f32 to vector<4x16xf32>
    %62 = arith.addf %61, %60 : vector<4x16xf32>
    %63 = arith.divf %61, %62 : vector<4x16xf32>
    %cst_35 = arith.constant dense<0.000000e+00> : vector<4x16xf32>
    %64 = tpu.matmul %14, %55, %cst_35 {dimension_numbers = #tpu.dot_dimension_numbers<[1], [0], [0], [1], [0, 0, 1, 1], [], []>} : vector<4x8xf32>, vector<8x16xf32>, vector<4x16xf32> -> vector<4x16xf32>
    %65 = vector.broadcast %15 : vector<4x1xf32> to vector<4x16xf32>
    %66 = arith.addf %64, %65 : vector<4x16xf32>
    %67 = arith.negf %66 : vector<4x16xf32>
    %68 = math.exp %67 : vector<4x16xf32>
    %cst_36 = arith.constant 1.000000e+00 : f32
    %69 = vector.broadcast %cst_36 : f32 to vector<4x16xf32>
    %70 = arith.addf %69, %68 : vector<4x16xf32>
    %71 = arith.divf %69, %70 : vector<4x16xf32>
    %72 = tpu.concatenate %35, %63 in 0 : vector<4x16xf32>, vector<4x16xf32> -> vector<8x16xf32>
    %73 = tpu.concatenate %43, %71 in 0 : vector<4x16xf32>, vector<4x16xf32> -> vector<8x16xf32>
    %c0_37 = arith.constant 0 : index
    %c0_38 = arith.constant 0 : index
    %74 = vector.load %arg4[%c0_37, %c0_38] : memref<16x256xbf16, #tpu.memory_space<vmem>>, vector<16x256xbf16>
    %cst_39 = arith.constant dense<0.000000e+00> : vector<8x256xf32>
    %75 = tpu.matmul %72, %74, %cst_39 {dimension_numbers = #tpu.dot_dimension_numbers<[1], [0], [0], [1], [0, 0, 1, 1], [], []>} : vector<8x16xf32>, vector<16x256xbf16>, vector<8x256xf32> -> vector<8x256xf32>
    %c0_40 = arith.constant 0 : index
    %c0_41 = arith.constant 0 : index
    %76 = vector.load %arg5[%c0_40, %c0_41] : memref<16x256xbf16, #tpu.memory_space<vmem>>, vector<16x256xbf16>
    %cst_42 = arith.constant dense<0.000000e+00> : vector<8x256xf32>
    %77 = tpu.matmul %73, %76, %cst_42 {dimension_numbers = #tpu.dot_dimension_numbers<[1], [0], [0], [1], [0, 0, 1, 1], [], []>} : vector<8x16xf32>, vector<16x256xbf16>, vector<8x256xf32> -> vector<8x256xf32>
    %78 = arith.mulf %75, %77 : vector<8x256xf32>
    %79 = arith.mulf %1, %78 : vector<8x256xf32>
    %80 = vector.shape_cast %79 : vector<8x256xf32> to vector<2x4x256xf32>
    %c0_43 = arith.constant 0 : index
    %c0_44 = arith.constant 0 : index
    %c0_45 = arith.constant 0 : index
    %81 = vector.load %arg12[%c0_43, %c0_44, %c0_45] : memref<2x4x256xf32, #tpu.memory_space<vmem>>, vector<2x4x256xf32>
    tpu.vector_store %arg12[%c0_43, %c0_44, %c0_45], %80 {strides = array<i32>} : memref<2x4x256xf32, #tpu.memory_space<vmem>>, vector<2x4x256xf32>,
    return
  }
  func.func @transform_0(%arg0: i32) -> (i32, i32, i32) {
    %c0_i32 = arith.constant 0 : i32
    %c0_i32_0 = arith.constant 0 : i32
    %c0_i32_1 = arith.constant 0 : i32
    return %arg0, %c0_i32, %c0_i32_0 : i32, i32, i32
  }
  func.func @transform_1(%arg0: i32) -> (i32, i32) {
    %c0_i32 = arith.constant 0 : i32
    %c0_i32_0 = arith.constant 0 : i32
    %c0_i32_1 = arith.constant 0 : i32
    return %c0_i32, %c0_i32_0 : i32, i32
  }
  func.func @transform_2(%arg0: i32) -> (i32, i32) {
    %c0_i32 = arith.constant 0 : i32
    %c0_i32_0 = arith.constant 0 : i32
    %c0_i32_1 = arith.constant 0 : i32
    return %c0_i32, %c0_i32_0 : i32, i32
  }
  func.func @transform_3(%arg0: i32) -> (i32, i32) {
    %c0_i32 = arith.constant 0 : i32
    %c0_i32_0 = arith.constant 0 : i32
    %c0_i32_1 = arith.constant 0 : i32
    return %c0_i32, %c0_i32_0 : i32, i32
  }
  func.func @transform_4(%arg0: i32) -> (i32, i32) {
    %c0_i32 = arith.constant 0 : i32
    %c0_i32_0 = arith.constant 0 : i32
    %c0_i32_1 = arith.constant 0 : i32
    return %c0_i32, %c0_i32_0 : i32, i32
  }
  func.func @transform_5(%arg0: i32) -> (i32, i32) {
    %c0_i32 = arith.constant 0 : i32
    %c0_i32_0 = arith.constant 0 : i32
    %c0_i32_1 = arith.constant 0 : i32
    return %c0_i32, %c0_i32_0 : i32, i32
  }
  func.func @transform_6(%arg0: i32) -> (i32, i32) {
    %c0_i32 = arith.constant 0 : i32
    %c0_i32_0 = arith.constant 0 : i32
    %c0_i32_1 = arith.constant 0 : i32
    return %c0_i32, %c0_i32_0 : i32, i32
  }
  func.func @transform_7(%arg0: i32) -> (i32, i32) {
    %c0_i32 = arith.constant 0 : i32
    %c0_i32_0 = arith.constant 0 : i32
    %c0_i32_1 = arith.constant 0 : i32
    return %c0_i32, %c0_i32_0 : i32, i32
  }
  func.func @transform_8(%arg0: i32) -> (i32, i32) {
    %c0_i32 = arith.constant 0 : i32
    %c0_i32_0 = arith.constant 0 : i32
    %c0_i32_1 = arith.constant 0 : i32
    return %c0_i32, %c0_i32_0 : i32, i32
  }
  func.func @transform_9(%arg0: i32) -> (i32, i32) {
    %c0_i32 = arith.constant 0 : i32
    %c0_i32_0 = arith.constant 0 : i32
    %c0_i32_1 = arith.constant 0 : i32
    return %c0_i32, %c0_i32_0 : i32, i32
  }
  func.func @transform_10(%arg0: i32) -> (i32, i32) {
    %c0_i32 = arith.constant 0 : i32
    %c0_i32_0 = arith.constant 0 : i32
    %c0_i32_1 = arith.constant 0 : i32
    return %c0_i32, %c0_i32_0 : i32, i32
  }
  func.func @transform_11(%arg0: i32) -> (i32, i32, i32) {
    %c0_i32 = arith.constant 0 : i32
    %c0_i32_0 = arith.constant 0 : i32
    %c0_i32_1 = arith.constant 0 : i32
    return %arg0, %c0_i32, %c0_i32_0 : i32, i32, i32
  }
}

</mosaic_0001>

<bundles_post_ra>
// kernel: tpu_custom_call.1
= control target key start
LH: loop header
LB: loop body
LE: loop exit
PB: predicated region body
PF: predicated region fallthrough
CT: control target
= control target key end

     0   :  { %s1645_s0 = inlined_call_operand.vmem [shape: f32[2,4,256], index: 0, kind: input, shape index: {}]   ;;  %s1646_s1 = inlined_call_operand.vmem [shape: bf16[256,16], index: 1, kind: input, shape index: {}]   ;;  %s1647_s2 = inlined_call_operand.vmem [shape: bf16[256,16], index: 2, kind: input, shape index: {}]   ;;  %s1648_s3 = inlined_call_operand.vmem [shape: bf16[16,256], index: 3, kind: input, shape index: {}]   ;;  %s1649_s4 = inlined_call_operand.vmem [shape: bf16[16,256], index: 4, kind: input, shape index: {}]   ;;  %s1650_s5 = inlined_call_operand.vmem [shape: f32[8,4], index: 5, kind: input, shape index: {}]   ;;  %s1651_s6 = inlined_call_operand.vmem [shape: f32[8,1], index: 6, kind: input, shape index: {}]   ;;  %s1652_s7 = inlined_call_operand.vmem [shape: f32[4,8], index: 7, kind: input, shape index: {}]   ;;  %s1653_s8 = inlined_call_operand.vmem [shape: f32[4,1], index: 8, kind: input, shape index: {}]   ;;  %s1654_s9 = inlined_call_operand.vmem [shape: f32[4,8], index: 9, kind: input, shape index: {}]   ;;  %s1655_s10 = inlined_call_operand.vmem [shape: f32[4,1], index: 10, kind: input, shape index: {}]   ;;  %s1656_s11 = inlined_call_operand.hbm [shape: f32[2,4,256], index: 11, kind: output, shape index: {}]  }
   0x1   :  { %v1316_v0 = vld [vmem:[%s1646_s1 + $0x78] sm:$0xff]   ;;  %v1320_v4 = vld [vmem:[%s1646_s1 + $0x70] sm:$0xff]   ;;  %v1324_v8 = vld [vmem:[%s1646_s1 + $0x68] sm:$0xff]  }
   0x2   :  { %v1317_v1 = vld [vmem:[%s1647_s2 + $0x78] sm:$0xff]   ;;  %1214 = vmatprep.subr.bf16.mxu0 %v1316_v0  ;;  %v1321_v5 = vld [vmem:[%s1647_s2 + $0x70] sm:$0xff]   ;;  %v1325_v9 = vld [vmem:[%s1647_s2 + $0x68] sm:$0xff]  }
   0x3   :  { %v1318_v2 = vld [vmem:[%s1646_s1 + $0x38] sm:$0xff]   ;;  %1233 = vmatprep.subr.bf16.mxu1 %v1317_v1  ;;  %v1322_v6 = vld [vmem:[%s1646_s1 + $0x30] sm:$0xff]   ;;  %v1326_v10 = vld [vmem:[%s1646_s1 + $0x28] sm:$0xff]  }
   0x4   :  { %v1319_v3 = vld [vmem:[%s1647_s2 + $0x38] sm:$0xff]   ;;  %1215 = vmatpush3.bf16.msra.mxu0 %v1318_v2  ;;  %v1323_v7 = vld [vmem:[%s1647_s2 + $0x30] sm:$0xff]   ;;  %v1327_v11 = vld [vmem:[%s1647_s2 + $0x28] sm:$0xff]  }
   0x5   :  { %1234 = vmatpush3.bf16.msra.mxu1 %v1319_v3  ;;  %1216 = vmatprep.subr.bf16.mxu0 %v1320_v4  ;;  %v1328_v12 = vld [vmem:[%s1646_s1 + $0x60] sm:$0xff]   ;;  %v1332_v16 = vld [vmem:[%s1646_s1 + $0x58] sm:$0xff]   ;;  %v1336_v20 = vld [vmem:[%s1646_s1 + $0x50] sm:$0xff]  }
   0x6   :  { %1235 = vmatprep.subr.bf16.mxu1 %v1321_v5  ;;  %v1329_v13 = vld [vmem:[%s1647_s2 + $0x60] sm:$0xff]   ;;  %v1333_v17 = vld [vmem:[%s1647_s2 + $0x58] sm:$0xff]   ;;  %v1337_v21 = vld [vmem:[%s1647_s2 + $0x50] sm:$0xff]  }
   0x7   :  { %v1330_v14 = vld [vmem:[%s1646_s1 + $0x20] sm:$0xff]   ;;  %v1334_v18 = vld [vmem:[%s1646_s1 + $0x18] sm:$0xff]   ;;  %v1338_v22 = vld [vmem:[%s1646_s1 + $0x10] sm:$0xff]  }
   0x8   :  { %1217 = vmatpush3.bf16.msra.mxu0 %v1322_v6  ;;  %v1331_v15 = vld [vmem:[%s1647_s2 + $0x20] sm:$0xff]   ;;  %v1335_v19 = vld [vmem:[%s1647_s2 + $0x18] sm:$0xff]   ;;  %v1339_v23 = vld [vmem:[%s1647_s2 + $0x10] sm:$0xff]  }
   0x9   :  { %1236 = vmatpush3.bf16.msra.mxu1 %v1323_v7  ;;  %1218 = vmatprep.subr.bf16.mxu0 %v1324_v8  ;;  %v1340_v24 = vld [vmem:[%s1646_s1 + $0x48] sm:$0xff]   ;;  %v1344_v28 = vld [vmem:[%s1646_s1 + $0x40] sm:$0xff]  }
   0xa   :  { %1237 = vmatprep.subr.bf16.mxu1 %v1325_v9  ;;  %v1341_v25 = vld [vmem:[%s1647_s2 + $0x48] sm:$0xff]   ;;  %v1345_v29 = vld [vmem:[%s1647_s2 + $0x40] sm:$0xff]  }
   0xb   :  { %v1342_v26 = vld [vmem:[%s1646_s1 + $0x8] sm:$0xff]   ;;  %v1346_v30 = vld [vmem:[%s1646_s1] sm:$0xff]  }
   0xc   :  { %1219 = vmatpush3.bf16.msra.mxu0 %v1326_v10  ;;  %v1343_v27 = vld [vmem:[%s1647_s2 + $0x8] sm:$0xff]   ;;  %v1347_v31 = vld [vmem:[%s1647_s2] sm:$0xff]  }
   0xd   :  { %1238 = vmatpush3.bf16.msra.mxu1 %v1327_v11  ;;  %1220 = vmatprep.subr.bf16.mxu0 %v1328_v12  ;;  %v1559_v32 = vld [vmem:[%s1645_s0] sm:$0xff]  ;;  %v1564_v33 = vld [vmem:[%s1645_s0 + $0x8] sm:$0xff] }
   0xe   :  { %1239 = vmatprep.subr.bf16.mxu1 %v1329_v13  ;;  %v77_v34 = vcombine.high %v1559_v32, %v1564_v33  ;;  %v76_v35 = vcombine.low %v1559_v32, %v1564_v33 }
  0x10   :  { %1221 = vmatpush3.bf16.msra.mxu0 %v1330_v14 }
  0x11   :  { %1240 = vmatpush3.bf16.msra.mxu1 %v1331_v15  ;;  %1222 = vmatprep.subr.bf16.mxu0 %v1332_v16 }
  0x12   :  { %1241 = vmatprep.subr.bf16.mxu1 %v1333_v17 }
  0x14   :  { %1223 = vmatpush3.bf16.msra.mxu0 %v1334_v18 }
  0x15   :  { %1242 = vmatpush3.bf16.msra.mxu1 %v1335_v19  ;;  %1224 = vmatprep.subr.bf16.mxu0 %v1336_v20 }
  0x16   :  { %1243 = vmatprep.subr.bf16.mxu1 %v1337_v21 }
  0x18   :  { %1225 = vmatpush3.bf16.msra.mxu0 %v1338_v22 }
  0x19   :  { %1244 = vmatpush3.bf16.msra.mxu1 %v1339_v23  ;;  %1226 = vmatprep.subr.bf16.mxu0 %v1340_v24 }
  0x1a   :  { %1245 = vmatprep.subr.bf16.mxu1 %v1341_v25 }
  0x1c   :  { %1227 = vmatpush3.bf16.msra.mxu0 %v1342_v26 }
  0x1d   :  { %1246 = vmatpush3.bf16.msra.mxu1 %v1343_v27  ;;  %1228 = vmatprep.subr.bf16.mxu0 %v1344_v28 }
  0x1e   :  { %1247 = vmatprep.subr.bf16.mxu1 %v1345_v29 }
  0x20   :  { %1229 = vmatpush3.bf16.msra.mxu0 %v1346_v30 }
  0x21   :  { %1248 = vmatpush3.bf16.msra.mxu1 %v1347_v31 }
  0x22   :  { %16 = vsyncpa [#allocation3], 0  ;;  %208 = vmatprep.mubr.f32.mxu0 %v77_v34  ;;  %375 = vmatprep.mubr.f32.mxu1 %v77_v34  ;;  %v1394_v36 = vmov 0.0   ;;  %vm1395_vm0 = vmmov 0   ;;  %v383_v37 = vld [vmem:[%s1651_s6] sm:$0xff]  ;;  %v1396_v38 = vmov 0  }
  0x23   :  { %209 = vmatmul.mubr.f32.vlgmr.msra.gmra.mxu0 %v76_v35  ;;  %1268 = vmatprep.subr.mxu0 %v1394_v36  ;;  %v385_v39 = vld [vmem:[%s1653_s8] sm:$0xf]  ;;  %vm397_vm1 = vcmask 1043456   ;;  %vm393_vm2 = vcmask 31744   ;;  %vm551_vm3 = vcmask 64512   ;;  %vm1035_vm4 = vcmask 130048  }
  0x24   :  { %376 = vmatmul.mubr.f32.vlgmr.msra.gmra.mxu1 %v76_v35  ;;  %1273 = vmatprep.subr.mxu1 %v1394_v36  ;;  %v382_v48 = vld [vmem:[%s1650_s5] sm:$0xff] }
  0x25   :  { %1270 = vmatprep.mubr.msk.f32.mxu0 %vm1395_vm0, %v1394_v36  ;;  %1275 = vmatprep.mubr.msk.f32.mxu1 %vm1395_vm0, %v1394_v36  ;;  %v387_v49 = vld [vmem:[%s1655_s10] sm:$0xf]  ;;  %v1352_v11 = vld [vmem:[%s1648_s3 + $0x4] ss:$8 sps:$4 sm:$0xff]  }
  0x26   :  { %1314 = vset.pattern.permute.xlu0 %v1396_v38  ;;  %1315 = vset.pattern.permute.xlu1 %v1396_v38  ;;  %v384_v57 = vld [vmem:[%s1652_s7] sm:$0xf]  ;;  %v1355_v12 = vld [vmem:[%s1649_s4 + $0x4] ss:$8 sps:$4 sm:$0xff]  }
  0x27   :  { %390 = vperm.xlu0 %1314, %v383_v37   ;;  %633 = vperm.xlu1 %1315, %v387_v49   ;;  %v386_v60 = vld [vmem:[%s1654_s9] sm:$0xf] }
  0x28   :  { %v1350_v13 = vld [vmem:[%s1648_s3] ss:$8 sps:$4 sm:$0xff]   ;;  %s1397_s3 = smov [#allocation2]  }
  0x29   :  { %v1353_v14 = vld [vmem:[%s1649_s4] ss:$8 sps:$4 sm:$0xff]   ;;  %s1149_s4 = sshll.u32 %s1397_s3, 4  ;;  %s1150_s4 = int_to_ptr.vmem [resolvable:$true] %s1149_s4 }
  0x2a   :  { %s1372_s20 = scalar_lea.vmem %s1150_s4, 256  ;;  %p1377_p1 = scmp.lt.s32.totalorder %s1150_s4, %s1150_s4 }
  0x2b   :  { %548 = vperm.xlu0 %1314, %v385_v39   ;;  %p1373_p0 = scmp.ne.s32.totalorder %s1150_s4, %s1372_s20  ;;  %p1378_p2 = scmp.lt.s32.totalorder %s1372_s20, %s1372_s20 }
  0x2d   :  { %p1379_p3 = por %p1378_p2, %p1377_p1 }
  0x2f   :  { %p1380_p4 = pnand %p1379_p3, %p1373_p0 }
  0xa2   :  { %v391_v50 = vpop.permute.xlu0 %390  ;;  %v634_v15 = vpop.permute.xlu1 %633 }
  0xa6   :  { %v549_v16 = vpop.permute.xlu0 %548 }
  0xe3   :  { %v1230_v40 = vpop.f32.mrf.mxu0 }
  0xe4   :  { %v1249_v41 = vpop.f32.mrf.mxu1 }
  0xe5   :  { %v1231_v42 = vpop.f32.mrf.mxu0 }
  0xe6   :  { %v1250_v43 = vpop.f32.mrf.mxu1  ;;  %v1232_v44 = vadd.f32 %v1231_v42, %v1230_v40 }
  0xe7   :  { %v1251_v45 = vadd.f32 %v1250_v43, %v1249_v41 }
  0xe8   :  { %v214_v46 = vmul.f32 0.0625, %v1232_v44 }
  0xe9   :  { %v381_v47 = vmul.f32 0.0625, %v1251_v45 }
  0xea   :  { %1269 = vmatpush3.msk.msra.mxu0 %vm397_vm1, %v214_v46  ;;  %v715_v61 = vrot.slane %v214_v46, 4 }
  0xeb   :  { %1274 = vmatpush3.msk.msra.mxu1 %vm397_vm1, %v381_v47  ;;  %1271 = vmatmul.mubr.msk.f32.vlgmr.msra.gmra.mxu0 %vm393_vm2, %v382_v48  ;;  %v789_v62 = vrot.slane %v381_v47, 4 }
  0xec   :  { %1276 = vmatmul.mubr.msk.f32.vlgmr.msra.gmra.mxu1 %vm393_vm2, %v382_v48  ;;  %1278 = vmatprep.subr.mxu0 %v1394_v36 }
  0xed   :  { %1283 = vmatprep.subr.mxu1 %v1394_v36  ;;  %1280 = vmatprep.mubr.msk.f32.mxu0 %vm1395_vm0, %v1394_v36 }
  0xee   :  { %1285 = vmatprep.mubr.msk.f32.mxu1 %vm1395_vm0, %v1394_v36 }
 0x1ab   :  { %v467_v51 = vpop.f32.mrf.mxu0 }
 0x1ac   :  { %v541_v52 = vpop.f32.mrf.mxu1  ;;  %v468_v53 = vadd.f32 %v467_v51, %v391_v50 }
 0x1ad   :  { %v542_v54 = vadd.f32 %v541_v52, %v391_v50  ;;  %v1272_v55 = vpop.f32.mrf.mxu0 }
 0x1ae   :  { %v1277_v56 = vpop.f32.mrf.mxu1  ;;  %v471_v58 = vmax.f32 %v468_v53, 0.0 }
 0x1af   :  { %v545_v59 = vmax.f32 %v542_v54, 0.0 }
 0x1b0   :  { %1279 = vmatpush3.msra.mxu0 %v471_v58 }
 0x1b1   :  { %1284 = vmatpush3.msra.mxu1 %v545_v59  ;;  %1281 = vmatmul.mubr.msk.f32.vlgmr.msra.gmra.mxu0 %vm551_vm3, %v384_v57 }
 0x1b2   :  { %1286 = vmatmul.mubr.msk.f32.vlgmr.msra.gmra.mxu1 %vm551_vm3, %v386_v60  ;;  %1288 = vmatprep.subr.mxu0 %v1394_v36 }
 0x1b3   :  { %1293 = vmatprep.subr.mxu1 %v1394_v36  ;;  %1289 = vmatpush3.msk.msra.mxu0 %vm397_vm1, %v715_v61 }
 0x1b4   :  { %1294 = vmatpush3.msk.msra.mxu1 %vm397_vm1, %v789_v62  ;;  %1290 = vmatprep.mubr.msk.f32.mxu0 %vm1395_vm0, %v1394_v36 }
 0x1b5   :  { %1295 = vmatprep.mubr.msk.f32.mxu1 %vm1395_vm0, %v1394_v36  ;;  %1291 = vmatmul.mubr.msk.f32.vlgmr.msra.gmra.mxu0 %vm393_vm2, %v382_v48 }
 0x1b6   :  { %1296 = vmatmul.mubr.msk.f32.vlgmr.msra.gmra.mxu1 %vm393_vm2, %v382_v48  ;;  %1298 = vmatprep.subr.mxu0 %v1394_v36 }
 0x1b7   :  { %1303 = vmatprep.subr.mxu1 %v1394_v36  ;;  %1300 = vmatprep.mubr.msk.f32.mxu0 %vm1395_vm0, %v1394_v36 }
 0x1b8   :  { %1305 = vmatprep.mubr.msk.f32.mxu1 %vm1395_vm0, %v1394_v36 }
 0x271   :  { %v621_v63 = vpop.f32.mrf.mxu0 }
 0x272   :  { %v705_v0 = vpop.f32.mrf.mxu1  ;;  %v622_v17 = vadd.f32 %v621_v63, %v549_v16 }
 0x273   :  { %v1282_v1 = vpop.f32.mrf.mxu0  ;;  %v706_v18 = vadd.f32 %v705_v0, %v634_v15 }
 0x274   :  { %v1287_v2 = vpop.f32.mrf.mxu1  ;;  %v1197_v19 = vmul.f32 -1.442695, %v622_v17 }
 0x275   :  { %v784_v3 = vpop.f32.mrf.mxu0  ;;  %v1199_v20 = vmul.f32 -1.442695, %v706_v18 }
 0x276   :  { %v858_v4 = vpop.f32.mrf.mxu1  ;;  %v785_v5 = vadd.f32 %v784_v3, %v391_v50  ;;  %1356 = vpow2.f32 %v1197_v19 }
 0x277   :  { %v859_v6 = vadd.f32 %v858_v4, %v391_v50  ;;  %v1292_v7 = vpop.f32.mrf.mxu0  ;;  %1358 = vpow2.f32 %v1199_v20 }
 0x278   :  { %v1297_v8 = vpop.f32.mrf.mxu1  ;;  %v788_v9 = vmax.f32 %v785_v5, 0.0 }
 0x279   :  { %v862_v10 = vmax.f32 %v859_v6, 0.0 }
 0x27a   :  { %1299 = vmatpush3.msra.mxu0 %v788_v9 }
 0x27b   :  { %1304 = vmatpush3.msra.mxu1 %v862_v10  ;;  %1301 = vmatmul.mubr.msk.f32.vlgmr.msra.gmra.mxu0 %vm551_vm3, %v384_v57 }
 0x27c   :  { %1306 = vmatmul.mubr.msk.f32.vlgmr.msra.gmra.mxu1 %vm551_vm3, %v386_v60  ;;  %1071 = vmatprep.mubr.f32.mxu0 %v1394_v36 }
 0x27d   :  { %1125 = vmatprep.mubr.f32.mxu1 %v1394_v36  ;;  %1053 = vmatprep.subr.bf16.mxu0 %v1352_v11 }
 0x27e   :  { %1107 = vmatprep.subr.bf16.mxu1 %v1355_v12  ;;  %1054 = vmatpush1.bf16.msra.mxu0 %v1350_v13 }
 0x27f   :  { %1108 = vmatpush1.bf16.msra.mxu1 %v1353_v14 }
 0x283   :  { %v1357_v29 = vpop.eup %1356 }
 0x284   :  { %v1359_v30 = vpop.eup %1358  ;;  %v628_v35 = vadd.f32 1.0, %v1357_v29 }
 0x285   :  { %v712_v37 = vadd.f32 1.0, %v1359_v30 }
 0x33b   :  { %v929_v21 = vpop.f32.mrf.mxu0 }
 0x33c   :  { %v1005_v22 = vpop.f32.mrf.mxu1  ;;  %v930_v23 = vadd.f32 %v929_v21, %v549_v16 }
 0x33d   :  { %v1006_v24 = vadd.f32 %v1005_v22, %v634_v15  ;;  %v1302_v25 = vpop.f32.mrf.mxu0 }
 0x33e   :  { %v1307_v26 = vpop.f32.mrf.mxu1  ;;  %v1205_v27 = vmul.f32 -1.442695, %v930_v23 }
 0x33f   :  { %v1207_v28 = vmul.f32 -1.442695, %v1006_v24 }
 0x340   :  { %1360 = vpow2.f32 %v1205_v27 }
 0x341   :  { %1362 = vpow2.f32 %v1207_v28 }
 0x34d   :  { %v1361_v31 = vpop.eup %1360 }
 0x34e   :  { %v1363_v34 = vpop.eup %1362  ;;  %v936_v36 = vadd.f32 1.0, %v1361_v31 }
 0x34f   :  { %v1012_v38 = vadd.f32 1.0, %v1363_v34 }
 0x350   :  { %1364 = vrcp.f32 %v936_v36 }
 0x351   :  { %1366 = vrcp.f32 %v1012_v38 }
 0x352   :  { %1368 = vrcp.f32 %v628_v35 }
 0x353   :  { %1370 = vrcp.f32 %v712_v37 }
 0x35d   :  { %v1365_v39 = vpop.eup %1364 }
 0x35e   :  { %v1367_v40 = vpop.eup %1366  ;;  %v1016_v41 = vrot.slane %v1365_v39, 4 }
 0x35f   :  { %v1369_v42 = vpop.eup %1368  ;;  %v1020_v43 = vrot.slane %v1367_v40, 4 }
 0x360   :  { %v1371_v44 = vpop.eup %1370  ;;  %v1018_v45 = vsel %vm397_vm1, %v1369_v42, %v1016_v41 }
 0x361   :  { %1210 = vmatmul.mubr.msk.f32.vlgmr.msra.gmra.mxu0 %vm1035_vm4, %v1018_v45  ;;  %v1022_v46 = vsel %vm397_vm1, %v1371_v44, %v1020_v43 }
 0x362   :  { %1213 = vmatmul.mubr.msk.f32.vlgmr.msra.gmra.mxu1 %vm1035_vm4, %v1022_v46 }
 0x421   :  { %v1073_v47 = vpop.f32.mrf.mxu0 }
 0x422   :  { %v1127_v48 = vpop.f32.mrf.mxu1 }
 0x423   :  { %v1075_v49 = vpop.f32.mrf.mxu0  ;;  %v1132_v51 = vmul.f32 %v1127_v48, %v1073_v47 }
 0x424   :  { %v1129_v50 = vpop.f32.mrf.mxu1 }
 0x425   :  { %v1133_v52 = vmul.f32 %v1129_v50, %v1075_v49 }
 0x427   :  { %v1136_v53 = vcombine.low %v1132_v51, %v1133_v52  ;;  %v1137_v54 = vcombine.high %v1132_v51, %v1133_v52 }
 0x429   :  { %v1140_v55 = vmul.f32 %v1136_v53, %v1559_v32  ;;  %v1141_v56 = vmul.f32 %v1137_v54, %v1564_v33 }
 0x42b   :  { %1142 = vst [vmem:[#allocation2] sm:$0xff] %v1140_v55  ;;  %1143 = vst [vmem:[#allocation2 + $0x8] sm:$0xff] %v1141_v56 }
 0x42c   :  { %1383 = shalt.err (!%p1380_p4)
}
 0x42d   :  { %s1398_s21 = smov 128   ;;  %s1399_s22 = smov 8  }
 0x42e   :  { %1155 = dma.vmem_to_hbm [thread:$0]  %s1150_s4, 256, %s1656_s11, [#allocation3], %s1398_s21, %s1398_s21, %s1399_s22  }
 0x42f   :  { %1392 = dma.done.wait [#allocation3], 256  }
 0x430   :  { %1393 = vsyncadd [#allocation3], 4294967040 }
 0x431   :  { %1159 = vsyncpa [#allocation3], 1 }

</bundles_post_ra>
